<compile_context>
chip_gen: v5e
topology: v5e:2x2
jax: 0.10.0
libtpu: 0.0.40
codegen_flags: <defaults>
</compile_context>

<pallas_src>
import jax
import jax.numpy as jnp
from jax import lax
from jax.experimental import pallas as pl
from jax.experimental.pallas import tpu as pltpu


def _make_conv_relu_kernel(Cin, W, KH, KW, M):
    # Tap lane-shifts on the flattened (n, h, w) axis; order (kh, kw) outer,
    # Cin contiguous inside each tap -> K index order (kh, kw, ci).
    shifts = [kh * W + kw for kh in range(KH) for kw in range(KW)]

    def kernel(x_ref, w_ref, b_ref, o_ref):
        # x_ref: (Cin, Mpad)   activations, lanes = flattened (n, h, w) + halo pad
        # w_ref: (Cout, K)     weights, K ordered (kh, kw, ci)
        # b_ref: (Cout, 1)     bias
        # o_ref: (Cout, M)     output on the full H*W grid (lane-dense)
        x = x_ref[...]

        # Tap gather: each tap is ONE static lane-offset window of the flat
        # spatial axis (cheap shifted load), concatenated along sublanes only.
        patches = jnp.concatenate([x[:, s:s + M] for s in shifts], axis=0)  # (K, M)

        # Single non-batched MXU contraction; true-f32 precision is free at
        # this (<1%) MXU occupancy.
        acc = jnp.dot(w_ref[...], patches,
                      preferred_element_type=jnp.float32,
                      precision=lax.Precision.HIGHEST)                      # (Cout, M)

        o_ref[...] = jnp.maximum(acc + b_ref[...], 0.0).astype(o_ref.dtype)

    return kernel


def basic_conv2d(x_nchw, kernel_hwio, bias):
    """relu(conv2d(x, W, b)), valid padding, stride 1 — BasicConv2d.forward.

    x_nchw:      (N, Cin, H, W)       float32, NCHW (same as the PyTorch module)
    kernel_hwio: (KH, KW, Cin, Cout)  the `kernel` array the PyTorch ctor receives
                                      (it transposes to OIHW internally)
    bias:        (Cout,)              float32
    """
    N, Cin, H, W = x_nchw.shape
    KH, KW, Cin2, Cout = kernel_hwio.shape
    assert Cin == Cin2
    Ho, Wo = H - KH + 1, W - KW + 1
    HW = H * W
    M = N * HW                               # flattened (n, h, w) lane axis
    K = KH * KW * Cin
    shift_max = (KH - 1) * W + (KW - 1)
    Mpad = pl.cdiv(M + shift_max, 128) * 128  # right halo so every tap window is in-bounds

    # Tiny one-time XLA prep (few KB):
    #  x: NCHW -> (Cin, N*H*W) lane-flat, zero-padded halo on the right.
    x_flat = jnp.transpose(x_nchw, (1, 0, 2, 3)).reshape(Cin, M).astype(jnp.float32)
    x_flat = jnp.pad(x_flat, ((0, 0), (0, Mpad - M)))
    #  weights: HWIO -> (Cout, K) with K ordered (kh, kw, ci) to match the taps.
    w_mat = jnp.transpose(kernel_hwio, (3, 0, 1, 2)).reshape(Cout, K).astype(jnp.float32)
    b_col = bias.astype(jnp.float32).reshape(Cout, 1)

    out_flat = pl.pallas_call(
        _make_conv_relu_kernel(Cin, W, KH, KW, M),
        out_shape=jax.ShapeDtypeStruct((Cout, M), jnp.float32),
        in_specs=[
            pl.BlockSpec(memory_space=pltpu.MemorySpace.VMEM),  # x (whole array)
            pl.BlockSpec(memory_space=pltpu.MemorySpace.VMEM),  # weights
            pl.BlockSpec(memory_space=pltpu.MemorySpace.VMEM),  # bias
        ],
        out_specs=pl.BlockSpec(memory_space=pltpu.MemorySpace.VMEM),
    )(x_flat, w_mat, b_col)

    # (Cout, N*H*W) computed on the full grid -> NCHW, keep only valid outputs.
    out = out_flat.reshape(Cout, N, H, W).transpose(1, 0, 2, 3)[:, :, :Ho, :Wo]
    return out


if __name__ == "__main__":
    key = jax.random.PRNGKey(0)
    k_x, k_w, k_b = jax.random.split(key, 3)

    # Small shapes: batch=2, in_channels=4, out_channels=8, 16x16 spatial, 3x3 kernel.
    N, Cin, H, W = 2, 4, 16, 16
    KH, KW, Cout = 3, 3, 8

    x = jax.random.normal(k_x, (N, Cin, H, W), dtype=jnp.float32)
    kernel_hwio = jax.random.normal(k_w, (KH, KW, Cin, Cout), dtype=jnp.float32) * 0.1
    bias = jax.random.normal(k_b, (Cout,), dtype=jnp.float32) * 0.1

    out = basic_conv2d(x, kernel_hwio, bias)
    out = jax.block_until_ready(out)

    # Pure-JAX reference (conv2d NCHW/OIHW + bias + relu), matching PyTorch
    # semantics, computed at HIGHEST precision so the check is not an
    # artifact of matching default bf16 MXU passes.
    w_oihw = jnp.transpose(kernel_hwio, (3, 2, 0, 1))
    ref = lax.conv_general_dilated(
        x, w_oihw, window_strides=(1, 1), padding="VALID",
        dimension_numbers=("NCHW", "OIHW", "NCHW"),
        precision=lax.Precision.HIGHEST)
    ref = jnp.maximum(ref + bias[None, :, None, None], 0.0)

    assert out.shape == (N, Cout, H - KH + 1, W - KW + 1)
    assert jnp.allclose(out, ref, atol=1e-4, rtol=1e-4)

    print("KERNEL_OK")
</pallas_src>

<mosaic_0001>
module attributes {stable_mosaic.version = 11 : i64} {
  func.func @kernel(%arg0: memref<4x640xf32, #tpu.memory_space<vmem>>, %arg1: memref<8x36xf32, #tpu.memory_space<vmem>>, %arg2: memref<8x1xf32, #tpu.memory_space<vmem>>, %arg3: memref<8x512xf32, #tpu.memory_space<vmem>>) attributes {dimension_semantics = [], scalar_prefetch = 0 : i64, scratch_operands = 0 : i64, tpu.core_type = #tpu.core_type<tc>} {
    %c0 = arith.constant 0 : index
    %c0_0 = arith.constant 0 : index
    %0 = vector.load %arg0[%c0, %c0_0] : memref<4x640xf32, #tpu.memory_space<vmem>>, vector<4x640xf32>
    %1 = vector.extract_strided_slice %0 {offsets = [0, 0], sizes = [4, 512], strides = [1, 1]} : vector<4x640xf32> to vector<4x512xf32>
    %2 = vector.extract_strided_slice %0 {offsets = [0, 1], sizes = [4, 512], strides = [1, 1]} : vector<4x640xf32> to vector<4x512xf32>
    %3 = vector.extract_strided_slice %0 {offsets = [0, 2], sizes = [4, 512], strides = [1, 1]} : vector<4x640xf32> to vector<4x512xf32>
    %4 = vector.extract_strided_slice %0 {offsets = [0, 16], sizes = [4, 512], strides = [1, 1]} : vector<4x640xf32> to vector<4x512xf32>
    %5 = vector.extract_strided_slice %0 {offsets = [0, 17], sizes = [4, 512], strides = [1, 1]} : vector<4x640xf32> to vector<4x512xf32>
    %6 = vector.extract_strided_slice %0 {offsets = [0, 18], sizes = [4, 512], strides = [1, 1]} : vector<4x640xf32> to vector<4x512xf32>
    %7 = vector.extract_strided_slice %0 {offsets = [0, 32], sizes = [4, 512], strides = [1, 1]} : vector<4x640xf32> to vector<4x512xf32>
    %8 = vector.extract_strided_slice %0 {offsets = [0, 33], sizes = [4, 512], strides = [1, 1]} : vector<4x640xf32> to vector<4x512xf32>
    %9 = vector.extract_strided_slice %0 {offsets = [0, 34], sizes = [4, 512], strides = [1, 1]} : vector<4x640xf32> to vector<4x512xf32>
    %10 = tpu.concatenate %1, %2, %3, %4, %5, %6, %7, %8, %9 in 0 : vector<4x512xf32>, vector<4x512xf32>, vector<4x512xf32>, vector<4x512xf32>, vector<4x512xf32>, vector<4x512xf32>, vector<4x512xf32>, vector<4x512xf32>, vector<4x512xf32> -> vector<36x512xf32>
    %c0_1 = arith.constant 0 : index
    %c0_2 = arith.constant 0 : index
    %11 = vector.load %arg1[%c0_1, %c0_2] : memref<8x36xf32, #tpu.memory_space<vmem>>, vector<8x36xf32>
    %cst = arith.constant dense<0.000000e+00> : vector<8x512xf32>
    %12 = tpu.matmul %11, %10, %cst {dimension_numbers = #tpu.dot_dimension_numbers<[1], [0], [0], [1], [0, 0, 1, 1], [], []>, precision = #tpu.contract_precision<fp32>} : vector<8x36xf32>, vector<36x512xf32>, vector<8x512xf32> -> vector<8x512xf32>
    %c0_3 = arith.constant 0 : index
    %c0_4 = arith.constant 0 : index
    %13 = vector.load %arg2[%c0_3, %c0_4] : memref<8x1xf32, #tpu.memory_space<vmem>>, vector<8x1xf32>
    %14 = vector.broadcast %13 : vector<8x1xf32> to vector<8x512xf32>
    %15 = arith.addf %12, %14 : vector<8x512xf32>
    %cst_5 = arith.constant 0.000000e+00 : f32
    %16 = vector.broadcast %cst_5 : f32 to vector<8x512xf32>
    %17 = arith.maximumf %15, %16 : vector<8x512xf32>
    %c0_6 = arith.constant 0 : index
    %c0_7 = arith.constant 0 : index
    %18 = vector.load %arg3[%c0_6, %c0_7] : memref<8x512xf32, #tpu.memory_space<vmem>>, vector<8x512xf32>
    tpu.vector_store %arg3[%c0_6, %c0_7], %17 {strides = array<i32>} : memref<8x512xf32, #tpu.memory_space<vmem>>, vector<8x512xf32>,
    return
  }
}

</mosaic_0001>

<bundles_post_ra>
// kernel: tpu_custom_call.1
= control target key start
LH: loop header
LB: loop body
LE: loop exit
PB: predicated region body
PF: predicated region fallthrough
CT: control target
= control target key end

     0   :  { %8 = vsyncpa [#allocation3], 0  ;;  %s1720_s0 = inlined_call_operand.hbm [shape: f32[4,640], index: 0, kind: input, shape index: {}]   ;;  %s1721_s1 = inlined_call_operand.vmem [shape: f32[8,36], index: 1, kind: input, shape index: {}]   ;;  %s1722_s2 = inlined_call_operand.vmem [shape: f32[8,1], index: 2, kind: input, shape index: {}]   ;;  %s1723_s3 = inlined_call_operand.hbm [shape: f32[8,512], index: 3, kind: output, shape index: {}]  }
   0x1   :  { %9 = vsyncpa [#allocation4], 0  ;;  %s15_s14 = sshll.u32 %s1720_s0, 4  ;;  %s1196_s15 = smov [#allocation2]   ;;  %s16_s14 = int_to_ptr.hbm [resolvable:$true] %s15_s14 }
   0x2   :  { %s17_s16 = sshll.u32 %s1196_s15, 4  ;;  %s18_s16 = int_to_ptr.vmem [resolvable:$true] %s17_s16 }
   0x3   :  { %20 = dma.hbm_to_vmem [thread:$0]  %s16_s14, 320, %s18_s16, [#allocation3]  }
   0x4   :  { %1192 = dma.done.wait [#allocation3], 320  }
   0x5   :  { %1193 = vsyncadd [#allocation3], 4294966976  ;;  %v1230_v0 = vld [vmem:[#allocation2] sm:$0xff]  ;;  %v1232_v1 = vld [vmem:[#allocation2 + $0x8] sm:$0xff]  ;;  %s1197_s0 = smov 127   ;;  %s1198_s17 = smov 126  }
   0x6   :  { %34 = vst [vmem:[#allocation1] ss:$2 sm:$0xff] %v1230_v0  ;;  %v1236_v2 = vld [vmem:[#allocation2 + $0x10] sm:$0xf]  ;;  %s1199_s18 = smov 112   ;;  %s1200_s19 = smov 111  }
   0x7   :  { %36 = vst [vmem:[#allocation1 + $0x10] ss:$2 sm:$0xff] %v1232_v1  ;;  %s1201_s20 = smov 110   ;;  %s1202_s21 = smov 96   ;;  %vm126_vm0 = vcmask 916480   ;;  %vm96_vm1 = vcmask 1031168  }
   0x8   :  { %51 = vst [vmem:[#allocation1 + $0x21] ss:$2 sm:$0xff] %v1236_v2  ;;  %s1203_s22 = smov 95   ;;  %s1204_s23 = smov 94   ;;  %vm214_vm2 = vcmask 785408   ;;  %vm67_vm3 = vcmask 1039360  }
   0x9   :  { %vm185_vm4 = vcmask 900096   ;;  %vm244_vm5 = vcmask 777216   ;;  %vm278_vm6 = vcmask 1043456   ;;  %vm155_vm7 = vcmask 908288   ;;  %s1121_s30 = sshll.u32 %s1723_s3, 4  ;;  %s1122_s30 = int_to_ptr.hbm [resolvable:$true] %s1121_s30 }
   0xa   :  { %vm273_vm8 = vcmask 769024   ;;  %vm302_vm9 = vcmask 293888  }
   0xd   :  { %v1239_v3 = vld.sshfl [vmem:[#allocation1] sm:$0xff pattern:$0x75316420]  ;;  %v1241_v4 = vld.sshfl [vmem:[#allocation1 + $0x8] sm:$0xff pattern:$0x75316420] }
   0xe   :  { %47 = vst [vmem:[#allocation1 + $0x1] ss:$2 sm:$0xff] %v1230_v0  ;;  %v1244_v5 = vld.sshfl [vmem:[#allocation1 + $0x10] sm:$0xff pattern:$0x75316420] }
   0xf   :  { %v1246_v6 = vld.sshfl [vmem:[#allocation1 + $0x18] sm:$0xff pattern:$0x75316420]  ;;  %v1248_v7 = vld.sshfl [vmem:[#allocation1 + $0x20] sm:$0xff pattern:$0x75316420] }
  0x10   :  { %49 = vst [vmem:[#allocation1 + $0x11] ss:$2 sm:$0xff] %v1232_v1 }
  0x11   :  { %80 = vst [vmem:[#allocation1 + $0x20] ss:$2 sm:$0xff] %v1236_v2 }
  0x15   :  { %v53_v8 = vld.sshfl [vmem:[#allocation1 + $0x8] sm:$0xff pattern:$0x75316420]  ;;  %v52_v9 = vld.sshfl [vmem:[#allocation1] sm:$0xff pattern:$0x75316420] }
  0x16   :  { %59 = vrot.lane.b32.xlu1 %v53_v8, %s1197_s0  ;;  %57 = vrot.lane.b32.xlu0 %v52_v9, %s1197_s0  ;;  %76 = vst [vmem:[#allocation1] ss:$2 sm:$0xff] %v1230_v0 }
  0x17   :  { %v54_v10 = vld.sshfl [vmem:[#allocation1 + $0x10] sm:$0xff pattern:$0x75316420]  ;;  %v1255_v11 = vld.sshfl [vmem:[#allocation1 + $0x18] sm:$0xff pattern:$0x75316420] }
  0x18   :  { %78 = vst [vmem:[#allocation1 + $0x10] ss:$2 sm:$0xff] %v1232_v1  ;;  %61 = vrot.lane.b32.xlu2 %v54_v10, %s1197_s0  ;;  %v1259_v12 = vld.sshfl [vmem:[#allocation1 + $0x20] sm:$0xff pattern:$0x75316420] }
  0x19   :  { %110 = vst [vmem:[#allocation1 + $0x21] ss:$2 sm:$0xff] %v1236_v2 }
  0x1d   :  { %v81_v13 = vld.sshfl [vmem:[#allocation1] sm:$0xff pattern:$0x75316420]  ;;  %v82_v14 = vld.sshfl [vmem:[#allocation1 + $0x8] sm:$0xff pattern:$0x75316420] }
  0x1e   :  { %86 = vrot.lane.b32.xlu1 %v81_v13, %s1198_s17  ;;  %106 = vst [vmem:[#allocation1 + $0x1] ss:$2 sm:$0xff] %v1230_v0 }
  0x1f   :  { %v83_v15 = vld.sshfl [vmem:[#allocation1 + $0x10] sm:$0xff pattern:$0x75316420]  ;;  %v1264_v16 = vld.sshfl [vmem:[#allocation1 + $0x18] sm:$0xff pattern:$0x75316420] }
  0x20   :  { %108 = vst [vmem:[#allocation1 + $0x11] ss:$2 sm:$0xff] %v1232_v1  ;;  %90 = vrot.lane.b32.xlu0 %v83_v15, %s1198_s17  ;;  %88 = vrot.lane.b32.xlu2 %v82_v14, %s1198_s17  ;;  %v1269_v17 = vld.sshfl [vmem:[#allocation1 + $0x20] sm:$0xff pattern:$0x75316420] }
  0x21   :  { %139 = vst [vmem:[#allocation1 + $0x20] ss:$2 sm:$0xff] %v1236_v2 }
  0x25   :  { %v112_v18 = vld.sshfl [vmem:[#allocation1 + $0x8] sm:$0xff pattern:$0x75316420]  ;;  %v111_v19 = vld.sshfl [vmem:[#allocation1] sm:$0xff pattern:$0x75316420] }
  0x26   :  { %118 = vrot.lane.b32.xlu1 %v112_v18, %s1199_s18  ;;  %135 = vst [vmem:[#allocation1] ss:$2 sm:$0xff] %v1230_v0 }
  0x27   :  { %v114_v20 = vld.sshfl [vmem:[#allocation1 + $0x18] sm:$0xff pattern:$0x75316420]  ;;  %v113_v21 = vld.sshfl [vmem:[#allocation1 + $0x10] sm:$0xff pattern:$0x75316420] }
  0x28   :  { %116 = vrot.lane.b32.xlu0 %v111_v19, %s1199_s18  ;;  %137 = vst [vmem:[#allocation1 + $0x10] ss:$2 sm:$0xff] %v1232_v1  ;;  %v1276_v22 = vld.sshfl [vmem:[#allocation1 + $0x20] sm:$0xff pattern:$0x75316420] }
  0x29   :  { %169 = vst [vmem:[#allocation1 + $0x21] ss:$2 sm:$0xff] %v1236_v2 }
  0x2d   :  { %v140_v23 = vld.sshfl [vmem:[#allocation1] sm:$0xff pattern:$0x75316420]  ;;  %v141_v24 = vld.sshfl [vmem:[#allocation1 + $0x8] sm:$0xff pattern:$0x75316420] }
  0x2e   :  { %120 = vrot.lane.b32.xlu1 %v113_v21, %s1199_s18  ;;  %165 = vst [vmem:[#allocation1 + $0x1] ss:$2 sm:$0xff] %v1230_v0 }
  0x2f   :  { %v143_v25 = vld.sshfl [vmem:[#allocation1 + $0x18] sm:$0xff pattern:$0x75316420]  ;;  %v142_v26 = vld.sshfl [vmem:[#allocation1 + $0x10] sm:$0xff pattern:$0x75316420] }
  0x30   :  { %145 = vrot.lane.b32.xlu0 %v140_v23, %s1200_s19  ;;  %167 = vst [vmem:[#allocation1 + $0x11] ss:$2 sm:$0xff] %v1232_v1  ;;  %v174_v27 = vld.sshfl [vmem:[#allocation1 + $0x20] sm:$0xff pattern:$0x75316420] }
  0x31   :  { %198 = vst [vmem:[#allocation1 + $0x20] ss:$2 sm:$0xff] %v1236_v2 }
  0x35   :  { %v170_v28 = vld.sshfl [vmem:[#allocation1] sm:$0xff pattern:$0x75316420]  ;;  %v171_v29 = vld.sshfl [vmem:[#allocation1 + $0x8] sm:$0xff pattern:$0x75316420] }
  0x36   :  { %147 = vrot.lane.b32.xlu1 %v141_v24, %s1200_s19  ;;  %175 = vrot.lane.b32.xlu2 %v170_v28, %s1201_s20  ;;  %194 = vst [vmem:[#allocation1] ss:$2 sm:$0xff] %v1230_v0 }
  0x37   :  { %v172_v30 = vld.sshfl [vmem:[#allocation1 + $0x10] sm:$0xff pattern:$0x75316420]  ;;  %v173_v31 = vld.sshfl [vmem:[#allocation1 + $0x18] sm:$0xff pattern:$0x75316420] }
  0x38   :  { %151 = vrot.lane.b32.xlu0 %v143_v25, %s1200_s19  ;;  %196 = vst [vmem:[#allocation1 + $0x10] ss:$2 sm:$0xff] %v1232_v1  ;;  %v203_v32 = vld.sshfl [vmem:[#allocation1 + $0x20] sm:$0xff pattern:$0x75316420] }
  0x39   :  { %228 = vst [vmem:[#allocation1 + $0x21] ss:$2 sm:$0xff] %v1236_v2 }
  0x3d   :  { %v199_v33 = vld.sshfl [vmem:[#allocation1] sm:$0xff pattern:$0x75316420]  ;;  %v200_v34 = vld.sshfl [vmem:[#allocation1 + $0x8] sm:$0xff pattern:$0x75316420] }
  0x3e   :  { %149 = vrot.lane.b32.xlu1 %v142_v26, %s1200_s19  ;;  %179 = vrot.lane.b32.xlu2 %v172_v30, %s1201_s20  ;;  %224 = vst [vmem:[#allocation1 + $0x1] ss:$2 sm:$0xff] %v1230_v0 }
  0x3f   :  { %v201_v35 = vld.sshfl [vmem:[#allocation1 + $0x10] sm:$0xff pattern:$0x75316420]  ;;  %v202_v36 = vld.sshfl [vmem:[#allocation1 + $0x18] sm:$0xff pattern:$0x75316420] }
  0x40   :  { %177 = vrot.lane.b32.xlu0 %v171_v29, %s1201_s20  ;;  %226 = vst [vmem:[#allocation1 + $0x11] ss:$2 sm:$0xff] %v1232_v1  ;;  %v233_v37 = vld.sshfl [vmem:[#allocation1 + $0x20] sm:$0xff pattern:$0x75316420] }
  0x41   :  { %257 = vst [vmem:[#allocation1 + $0x20] ss:$2 sm:$0xff] %v1236_v2 }
  0x45   :  { %v230_v38 = vld.sshfl [vmem:[#allocation1 + $0x8] sm:$0xff pattern:$0x75316420]  ;;  %v229_v39 = vld.sshfl [vmem:[#allocation1] sm:$0xff pattern:$0x75316420] }
  0x46   :  { %208 = vrot.lane.b32.xlu2 %v201_v35, %s1202_s21  ;;  %204 = vrot.lane.b32.xlu1 %v199_v33, %s1202_s21  ;;  %253 = vst [vmem:[#allocation1] ss:$2 sm:$0xff] %v1230_v0  ;;  %v295_v35 = vld [vmem:[%s1721_s1] sm:$0xff] }
  0x47   :  { %v231_v40 = vld.sshfl [vmem:[#allocation1 + $0x10] sm:$0xff pattern:$0x75316420]  ;;  %v232_v41 = vld.sshfl [vmem:[#allocation1 + $0x18] sm:$0xff pattern:$0x75316420] }
  0x48   :  { %238 = vrot.lane.b32.xlu0 %v231_v40, %s1203_s22  ;;  %255 = vst [vmem:[#allocation1 + $0x10] ss:$2 sm:$0xff] %v1232_v1  ;;  %v262_v44 = vld.sshfl [vmem:[#allocation1 + $0x20] sm:$0xff pattern:$0x75316420] }
  0x4d   :  { %v258_v42 = vld.sshfl [vmem:[#allocation1] sm:$0xff pattern:$0x75316420]  ;;  %v259_v43 = vld.sshfl [vmem:[#allocation1 + $0x8] sm:$0xff pattern:$0x75316420] }
  0x4e   :  { %206 = vrot.lane.b32.xlu1 %v200_v34, %s1202_s21  ;;  %234 = vrot.lane.b32.xlu2 %v229_v39, %s1203_s22 }
  0x4f   :  { %v260_v45 = vld.sshfl [vmem:[#allocation1 + $0x10] sm:$0xff pattern:$0x75316420]  ;;  %v261_v46 = vld.sshfl [vmem:[#allocation1 + $0x18] sm:$0xff pattern:$0x75316420] }
  0x50   :  { %263 = vrot.lane.b32.xlu0 %v258_v42, %s1204_s23 }
  0x56   :  { %210 = vrot.lane.b32.xlu1 %v202_v36, %s1202_s21  ;;  %236 = vrot.lane.b32.xlu2 %v230_v38, %s1203_s22 }
  0x58   :  { %265 = vrot.lane.b32.xlu0 %v259_v43, %s1204_s23 }
  0x5e   :  { %181 = vrot.lane.b32.xlu1 %v173_v31, %s1201_s20  ;;  %240 = vrot.lane.b32.xlu2 %v232_v41, %s1203_s22 }
  0x60   :  { %122 = vrot.lane.b32.xlu0 %v114_v20, %s1199_s18 }
  0x66   :  { %271 = vrot.lane.b32.xlu1 %v262_v44, %s1204_s23  ;;  %267 = vrot.lane.b32.xlu2 %v260_v45, %s1204_s23  ;;  %v304_v45 = vsel %vm302_vm9, %v295_v35, 0  ;;  %v1205_v35 = vmov 0  }
  0x67   :  { %1142 = vset.pattern.permute.xlu1 %v1205_v35  ;;  %1143 = vset.pattern.permute.xlu0 %v1205_v35 }
  0x68   :  { %269 = vrot.lane.b32.xlu0 %v261_v46, %s1204_s23 }
  0x6e   :  { %242 = vrot.lane.b32.xlu1 %v233_v37, %s1203_s22  ;;  %92 = vrot.lane.b32.xlu2 %v1264_v16, %s1198_s17 }
  0x70   :  { %212 = vrot.lane.b32.xlu0 %v203_v32, %s1202_s21 }
  0x72   :  { %v1307_v47 = vpop.permute.xlu2 %61 }
  0x76   :  { %94 = vrot.lane.b32.xlu1 %v1259_v12, %s1198_s17  ;;  %63 = vrot.lane.b32.xlu2 %v1255_v11, %s1197_s0 }
  0x78   :  { %183 = vrot.lane.b32.xlu0 %v174_v27, %s1201_s20 }
  0x7a   :  { %v89_v48 = vpop.permute.xlu2 %88 }
  0x7e   :  { %153 = vrot.lane.b32.xlu2 %v1276_v22, %s1200_s19 }
  0x80   :  { %65 = vrot.lane.b32.xlu0 %v1248_v7, %s1197_s0 }
  0x86   :  { %124 = vrot.lane.b32.xlu2 %v1269_v17, %s1199_s18 }
  0x88   :  { %v60_v49 = vpop.permute.xlu1 %59  ;;  %v58_v50 = vpop.permute.xlu0 %57 }
  0x89   :  { %v69_v12 = vsel %vm67_vm3, %v60_v49, %v1307_v47  ;;  %v68_v16 = vsel %vm67_vm3, %v58_v50, %v60_v49 }
  0x8a   :  { %v280_v21 = vsel %vm278_vm6, %v1241_v4, %v69_v12  ;;  %v279_v4 = vsel %vm278_vm6, %v1239_v3, %v68_v16 }
  0x8b   :  { %v1372_v3 = vand.u32 4294901760, %v280_v21  ;;  %v1375_v37 = vand.u32 4294901760, %v279_v4 }
  0x8d   :  { %v1429_v12 = vsub.f32 %v279_v4, %v1375_v37 }
  0x8f   :  { %v381_v4 = vand.u32 4294901760, %v1429_v12 }
  0x90   :  { %v87_v51 = vpop.permute.xlu1 %86  ;;  %v176_v52 = vpop.permute.xlu2 %175 }
  0x91   :  { %v97_v9 = vsel %vm96_vm1, %v87_v51, %v89_v48 }
  0x92   :  { %v1315_v53 = vpop.permute.xlu0 %90 }
  0x93   :  { %v98_v29 = vsel %vm96_vm1, %v89_v48, %v1315_v53 }
  0x98   :  { %v119_v54 = vpop.permute.xlu1 %118  ;;  %v1317_v55 = vpop.permute.xlu2 %179 }
  0x9a   :  { %v117_v56 = vpop.permute.xlu0 %116 }
  0x9b   :  { %v127_v10 = vsel %vm126_vm0, %v117_v56, %v119_v54 }
  0x9c   :  { %v283_v15 = vsel %vm278_vm6, %v97_v9, %v127_v10 }
  0x9d   :  { %v1351_v25 = vand.u32 4294901760, %v283_v15 }
  0x9f   :  { %v1382_v41 = vsub.f32 %v283_v15, %v1351_v25 }
  0xa0   :  { %v1319_v57 = vpop.permute.xlu1 %120  ;;  %v1321_v58 = vpop.permute.xlu2 %208 }
  0xa1   :  { %v128_v26 = vsel %vm126_vm0, %v119_v54, %v1319_v57  ;;  %v1401_v54 = vsub.f32 %v280_v21, %v1372_v3 }
  0xa2   :  { %v146_v59 = vpop.permute.xlu0 %145  ;;  %v284_v36 = vsel %vm278_vm6, %v98_v29, %v128_v26 }
  0xa3   :  { %v1389_v46 = vand.u32 4294901760, %v284_v36 }
  0xa5   :  { %v1423_v9 = vsub.f32 %v284_v36, %v1389_v46 }
  0xa8   :  { %v148_v60 = vpop.permute.xlu1 %147  ;;  %v235_v61 = vpop.permute.xlu2 %234 }
  0xa9   :  { %v156_v27 = vsel %vm155_vm7, %v146_v59, %v148_v60 }
  0xaa   :  { %v1323_v62 = vpop.permute.xlu0 %151 }
  0xb0   :  { %v1325_v63 = vpop.permute.xlu1 %149  ;;  %v237_v0 = vpop.permute.xlu2 %236 }
  0xb1   :  { %v245_v18 = vsel %vm244_vm5, %v235_v61, %v237_v0  ;;  %v157_v22 = vsel %vm155_vm7, %v148_v60, %v1325_v63  ;;  %v1411_v61 = vand.u32 4294901760, %v304_v45 }
  0xb2   :  { %v178_v1 = vpop.permute.xlu0 %177 }
  0xb3   :  { %v186_v17 = vsel %vm185_vm4, %v176_v52, %v178_v1  ;;  %v187_v23 = vsel %vm185_vm4, %v178_v1, %v1317_v55 }
  0xb4   :  { %v287_v30 = vsel %vm278_vm6, %v156_v27, %v186_v17  ;;  %v288_v32 = vsel %vm278_vm6, %v157_v22, %v187_v23  ;;  %v1449_v22 = vsub.f32 %v304_v45, %v1411_v61 }
  0xb5   :  { %v1377_v38 = vand.u32 4294901760, %v287_v30  ;;  %v1384_v42 = vand.u32 4294901760, %v288_v32 }
  0xb6   :  { %v1480_v36 = vand.u32 4294901760, %v1449_v22 }
  0xb7   :  { %v1409_v60 = vsub.f32 %v287_v30, %v1377_v38 }
  0xb8   :  { %v205_v2 = vpop.permute.xlu1 %204  ;;  %v1329_v8 = vpop.permute.xlu2 %240 }
  0xba   :  { %v1327_v7 = vpop.permute.xlu0 %238 }
  0xbb   :  { %v246_v28 = vsel %vm244_vm5, %v237_v0, %v1327_v7  ;;  %v1414_v0 = vsub.f32 %v288_v32, %v1384_v42  ;;  %v573_v32 = vand.u32 4294901760, %v1423_v9 }
  0xbd   :  { %v567_v26 = vand.u32 4294901760, %v1414_v0 }
  0xbf   :  { %v568_v45 = vsub.f32 %v1414_v0, %v567_v26 }
  0xc0   :  { %v207_v11 = vpop.permute.xlu1 %206  ;;  %v1342_v20 = vpop.permute.xlu2 %267 }
  0xc1   :  { %v215_v13 = vsel %vm214_vm2, %v205_v2, %v207_v11  ;;  %v216_v19 = vsel %vm214_vm2, %v207_v11, %v1321_v58 }
  0xc2   :  { %v264_v14 = vpop.permute.xlu0 %263  ;;  %v291_v24 = vsel %vm278_vm6, %v215_v13, %v245_v18  ;;  %v292_v31 = vsel %vm278_vm6, %v216_v19, %v246_v28  ;;  %v375_v13 = vand.u32 4294901760, %v1382_v41 }
  0xc3   :  { %v1365_v33 = vand.u32 4294901760, %v291_v24  ;;  %v1379_v39 = vand.u32 4294901760, %v292_v31 }
  0xc5   :  { %v1394_v50 = vsub.f32 %v291_v24, %v1365_v33  ;;  %v1404_v56 = vsub.f32 %v292_v31, %v1379_v39 }
  0xc7   :  { %v363_v11 = vand.u32 4294901760, %v1394_v50  ;;  %v561_v21 = vand.u32 4294901760, %v1404_v56 }
  0xc8   :  { %v1367_v34 = vpop.permute.xlu1 %210  ;;  %v1406_v59 = vpop.permute.xlu2 %92 }
  0xc9   :  { %v364_v28 = vsub.f32 %v1394_v50, %v363_v11  ;;  %v562_v30 = vsub.f32 %v1404_v56, %v561_v21 }
  0xca   :  { %v266_v40 = vpop.permute.xlu0 %265 }
  0xcb   :  { %v274_v43 = vsel %vm273_vm8, %v264_v14, %v266_v40  ;;  %v275_v44 = vsel %vm273_vm8, %v266_v40, %v1342_v20  ;;  %v158_v14 = vsel %vm155_vm7, %v1325_v63, %v1323_v62  ;;  %v369_v63 = vand.u32 4294901760, %v1409_v60 }
  0xcc   :  { %v306_v48 = vsel %vm278_vm6, %v274_v43, 0  ;;  %v308_v49 = vsel %vm278_vm6, %v275_v44, 0  ;;  %v365_v43 = vand.u32 4294901760, %v364_v28 }
  0xcd   :  { %v1396_v51 = vand.u32 4294901760, %v306_v48  ;;  %v1398_v52 = vand.u32 4294901760, %v308_v49  ;;  %v370_v31 = vsub.f32 %v1409_v60, %v369_v63 }
  0xcf   :  { %v356_v1 = vsub.f32 %v306_v48, %v1396_v51  ;;  %v1418_v2 = vsub.f32 %v308_v49, %v1398_v52  ;;  %326 = vmatpush.msra.mxu0 %v1396_v51  ;;  %434 = vmatpush.msra.mxu3 %v1396_v51  ;;  %v376_v48 = vsub.f32 %v1382_v41, %v375_v13  ;;  %v579_v49 = vand.u32 4294901760, %v1401_v54 }
  0xd0   :  { %v1425_v10 = vpop.permute.xlu1 %181  ;;  %v1482_v40 = vpop.permute.xlu2 %63 }
  0xd1   :  { %328 = vmatpush.msra.mxu0 %v1365_v33  ;;  %403 = vmatpush.msra.mxu2 %v356_v1  ;;  %v188_v15 = vsel %vm185_vm4, %v1317_v55, %v1425_v10  ;;  %v357_v16 = vand.u32 4294901760, %v356_v1  ;;  %v555_v17 = vand.u32 4294901760, %v1418_v2  ;;  %v99_v55 = vsel %vm96_vm1, %v1315_v53, %v1406_v59 }
  0xd2   :  { %436 = vmatpush.msra.mxu3 %v1365_v33  ;;  %v1442_v18 = vsel %vm278_vm6, %v158_v14, %v188_v15  ;;  %v1444_v19 = vpop.permute.xlu0 %122  ;;  %v574_v14 = vsub.f32 %v1423_v9, %v573_v32  ;;  %v382_v15 = vsub.f32 %v1429_v12, %v381_v4 }
  0xd3   :  { %v129_v23 = vsel %vm126_vm0, %v1319_v57, %v1444_v19  ;;  %330 = vmatpush.msra.mxu0 %v1377_v38  ;;  %406 = vmatpush.msra.mxu2 %v1394_v50  ;;  %v358_v24 = vsub.f32 %v356_v1, %v357_v16  ;;  %v556_v53 = vsub.f32 %v1418_v2, %v555_v17  ;;  %v563_v50 = vand.u32 4294901760, %v562_v30 }
  0xd4   :  { %v1461_v27 = vsel %vm278_vm6, %v99_v55, %v129_v23  ;;  %438 = vmatpush.msra.mxu3 %v1377_v38  ;;  %v371_v1 = vand.u32 4294901760, %v370_v31  ;;  %v338_v55 = vsub.f32 %v1449_v22, %v1480_v36  ;;  %v377_v23 = vand.u32 4294901760, %v376_v48 }
  0xd5   :  { %332 = vmatpush.msra.mxu0 %v1351_v25  ;;  %409 = vmatpush.msra.mxu2 %v1409_v60  ;;  %v359_v57 = vand.u32 4294901760, %v358_v24  ;;  %v557_v29 = vand.u32 4294901760, %v556_v53  ;;  %v580_v24 = vsub.f32 %v1401_v54, %v579_v49 }
  0xd6   :  { %440 = vmatpush.msra.mxu3 %v1351_v25  ;;  %v1508_v53 = vand.u32 4294901760, %v338_v55 }
  0xd7   :  { %334 = vmatpush.msra.mxu0 %v1375_v37  ;;  %360 = vmatpush.msra.mxu1 %v359_v57  ;;  %v581_v28 = vand.u32 4294901760, %v580_v24 }
  0xd8   :  { %412 = vmatpush.msra.mxu2 %v1382_v41  ;;  %442 = vmatpush.msra.mxu3 %v1375_v37  ;;  %v272_v44 = vpop.permute.xlu1 %271 }
  0xd9   :  { %464 = vmatpush.msrb.mxu0 %v357_v16  ;;  %366 = vmatpush.msra.mxu1 %v365_v43  ;;  %v569_v16 = vand.u32 4294901760, %v568_v45 }
  0xda   :  { %558 = vmatpush.msrb.mxu3 %v557_v29  ;;  %415 = vmatpush.msra.mxu2 %v1429_v12  ;;  %v270_v60 = vpop.permute.xlu0 %269  ;;  %v575_v12 = vand.u32 4294901760, %v574_v14 }
  0xdb   :  { %468 = vmatpush.msrb.mxu0 %v363_v11  ;;  %372 = vmatpush.msra.mxu1 %v371_v1  ;;  %v383_v11 = vand.u32 4294901760, %v382_v15  ;;  %v276_v29 = vsel %vm273_vm8, %v1342_v20, %v270_v60  ;;  %v217_v20 = vsel %vm214_vm2, %v1321_v58, %v1367_v34 }
  0xdc   :  { %524 = vmatpush.msrb.mxu2 %v1398_v52  ;;  %564 = vmatpush.msrb.mxu3 %v563_v50 }
  0xdd   :  { %472 = vmatpush.msrb.mxu0 %v369_v63  ;;  %378 = vmatpush.msra.mxu1 %v377_v23  ;;  %v154_v63 = vpop.permute.xlu2 %153 }
  0xde   :  { %526 = vmatpush.msrb.mxu2 %v1379_v39  ;;  %570 = vmatpush.msrb.mxu3 %v569_v16 }
  0xdf   :  { %476 = vmatpush.msrb.mxu0 %v375_v13  ;;  %384 = vmatpush.msra.mxu1 %v383_v11  ;;  %v277_v13 = vsel %vm273_vm8, %v270_v60, %v272_v44 }
  0xe0   :  { %528 = vmatpush.msrb.mxu2 %v1384_v42  ;;  %576 = vmatpush.msrb.mxu3 %v575_v12  ;;  %v243_v57 = vpop.permute.xlu1 %242  ;;  %v312_v30 = vsel %vm278_vm6, %v277_v13, 0 }
  0xe1   :  { %480 = vmatpush.msrb.mxu0 %v381_v4  ;;  %498 = vmatpush.msrb.mxu1 %v1396_v51  ;;  %v310_v51 = vsel %vm278_vm6, %v276_v29, 0  ;;  %v247_v4 = vsel %vm244_vm5, %v1327_v7, %v1329_v8  ;;  %v248_v58 = vsel %vm244_vm5, %v1329_v8, %v243_v57 }
  0xe2   :  { %530 = vmatpush.msrb.mxu2 %v1389_v46  ;;  %582 = vmatpush.msrb.mxu3 %v581_v28  ;;  %v213_v41 = vpop.permute.xlu0 %212  ;;  %v293_v7 = vsel %vm278_vm6, %v217_v20, %v247_v4 }
  0xe3   :  { %340 = vmatmul.f32.vlgmr.msra.gmra.mxu0 %v1508_v53  ;;  %418 = vmatmul.f32.vlgmr.msra.gmra.mxu2 %v1449_v22  ;;  %v218_v31 = vsel %vm214_vm2, %v1367_v34, %v213_v41  ;;  %v159_v34 = vsel %vm155_vm7, %v1323_v62, %v154_v63 }
  0xe4   :  { %446 = vmatmul.f32.vlgmr.msra.gmra.mxu3 %v1480_v36  ;;  %601 = vmatpush.msra.mxu0 %v1418_v2 }
  0xe5   :  { %696 = vmatpush.msra.mxu3 %v1398_v52  ;;  %500 = vmatpush.msrb.mxu1 %v1365_v33  ;;  %v1534_v33 = vand.u32 4294901760, %v310_v51  ;;  %v125_v43 = vpop.permute.xlu2 %124 }
  0xe6   :  { %532 = vmatpush.msrb.mxu2 %v1372_v3  ;;  %604 = vmatpush.msra.mxu0 %v1404_v56 }
  0xe7   :  { %698 = vmatpush.msra.mxu3 %v1379_v39  ;;  %502 = vmatpush.msrb.mxu1 %v1377_v38  ;;  %v294_v38 = vsel %vm278_vm6, %v218_v31, %v248_v58  ;;  %v1564_v62 = vsub.f32 %v310_v51, %v1534_v33 }
  0xe8   :  { %662 = vmatpush.msra.mxu2 %v555_v17  ;;  %607 = vmatpush.msra.mxu0 %v1414_v0  ;;  %v95_v2 = vpop.permute.xlu1 %94  ;;  %v1550_v17 = vand.u32 4294901760, %v312_v30 }
  0xe9   :  { %386 = vmatmul.f32.vlgmr.msra.gmra.mxu1 %v1411_v61  ;;  %700 = vmatpush.msra.mxu3 %v1384_v42 }
  0xea   :  { %666 = vmatpush.msra.mxu2 %v561_v21  ;;  %504 = vmatpush.msrb.mxu1 %v1351_v25  ;;  %v184_v8 = vpop.permute.xlu0 %183  ;;  %v1558_v21 = vand.u32 4294901760, %v293_v7  ;;  %v70_v25 = vsel %vm67_vm3, %v1307_v47, %v1482_v40  ;;  %v1586_v45 = vsub.f32 %v312_v30, %v1550_v17 }
  0xeb   :  { %610 = vmatpush.msra.mxu0 %v1423_v9  ;;  %v189_v56 = vsel %vm185_vm4, %v1425_v10, %v184_v8  ;;  %702 = vmatpush.msra.mxu3 %v1389_v46  ;;  %v100_v10 = vsel %vm96_vm1, %v1406_v59, %v95_v2  ;;  %v281_v44 = vsel %vm278_vm6, %v1244_v5, %v70_v25 }
  0xec   :  { %670 = vmatpush.msra.mxu2 %v567_v26  ;;  %506 = vmatpush.msrb.mxu1 %v1375_v37  ;;  %v290_v0 = vsel %vm278_vm6, %v159_v34, %v189_v56  ;;  %v1573_v26 = vand.u32 4294901760, %v294_v38  ;;  %v1581_v37 = vand.u32 4294901760, %v1442_v18  ;;  %v130_v59 = vsel %vm126_vm0, %v1444_v19, %v125_v43  ;;  %v296_v19 = vld [vmem:[%s1722_s2] sm:$0xff]  ;;  %s1206_s2 = smov [#allocation5]  }
  0xed   :  { %538 = vmatmul.f32.vlgmr.msrb.gmra.mxu2 %v1508_v53  ;;  %613 = vmatpush.msra.mxu0 %v1401_v54  ;;  %v1578_v47 = vand.u32 4294901760, %v290_v0  ;;  %v286_v9 = vsel %vm278_vm6, %v100_v10, %v130_v59  ;;  %v1597_v5 = vsub.f32 %v293_v7, %v1558_v21  ;;  %v1607_v48 = vand.u32 4294901760, %v281_v44  ;;  %s1119_s27 = sshll.u32 %s1206_s2, 4  ;;  %s1120_s27 = int_to_ptr.vmem [resolvable:$true] %s1119_s27 }
  0xee   :  { %632 = vmatpush.msra.mxu1 %v1398_v52  ;;  %674 = vmatpush.msra.mxu2 %v573_v32  ;;  %v753_v52 = vand.u32 4294901760, %v1564_v62  ;;  %v1600_v32 = vand.u32 4294901760, %v1461_v27  ;;  %v1610_v50 = vsub.f32 %v294_v38, %v1573_v26  ;;  %v1619_v14 = vand.u32 4294901760, %v286_v9 }
  0xef   :  { %704 = vmatpush.msra.mxu3 %v1372_v3  ;;  %482 = vmatmul.f32.vlgmr.msrb.gmra.mxu0 %v1411_v61  ;;  %v1613_v60 = vsub.f32 %v290_v0, %v1578_v47  ;;  %v764_v15 = vsub.f32 %v1442_v18, %v1581_v37  ;;  %v759_v16 = vand.u32 4294901760, %v1597_v5 }
  0xf0   :  { %584 = vmatmul.f32.vlgmr.msrb.gmra.mxu3 %v1411_v61  ;;  %722 = vmatpush.msrb.mxu0 %v1534_v33  ;;  %v754_v54 = vsub.f32 %v1564_v62, %v753_v52  ;;  %v770_v18 = vsub.f32 %v1461_v27, %v1600_v32  ;;  %v776_v27 = vsub.f32 %v281_v44, %v1607_v48 }
  0xf1   :  { %830 = vmatpush.msrb.mxu3 %v1534_v33  ;;  %634 = vmatpush.msra.mxu1 %v1379_v39  ;;  %v951_v39 = vand.u32 4294901760, %v1586_v45  ;;  %v963_v24 = vand.u32 4294901760, %v1613_v60  ;;  %v765_v12 = vand.u32 4294901760, %v764_v15  ;;  %v760_v28 = vsub.f32 %v1597_v5, %v759_v16 }
  0xf2   :  { %678 = vmatpush.msra.mxu2 %v579_v49  ;;  %724 = vmatpush.msrb.mxu0 %v1558_v21  ;;  %v66_v1 = vpop.permute.xlu0 %65  ;;  %v755_v11 = vand.u32 4294901760, %v754_v54  ;;  %v771_v57 = vand.u32 4294901760, %v770_v18  ;;  %v777_v51 = vand.u32 4294901760, %v776_v27 }
  0xf3   :  { %832 = vmatpush.msrb.mxu3 %v1558_v21  ;;  %v71_v55 = vsel %vm67_vm3, %v1482_v40, %v66_v1  ;;  %508 = vmatmul.f32.vlgmr.msrb.gmra.mxu1 %v1411_v61  ;;  %v957_v40 = vand.u32 4294901760, %v1610_v50  ;;  %v964_v29 = vsub.f32 %v1613_v60, %v963_v24  ;;  %v766_v41 = vsub.f32 %v764_v15, %v765_v12 }
  0xf4   :  { %799 = vmatpush.msrb.mxu2 %v1564_v62  ;;  %299 = vperm.xlu1 %1142, %v296_v19   ;;  %v282_v49 = vsel %vm278_vm6, %v1246_v6, %v71_v55  ;;  %v1643_v6 = vsub.f32 %v286_v9, %v1619_v14  ;;  %v761_v20 = vand.u32 4294901760, %v760_v28  ;;  %v772_v4 = vsub.f32 %v770_v18, %v771_v57 }
  0xf5   :  { %636 = vmatpush.msra.mxu1 %v1384_v42  ;;  %726 = vmatpush.msrb.mxu0 %v1581_v37  ;;  %v1636_v23 = vand.u32 4294901760, %v282_v49  ;;  %v952_v42 = vsub.f32 %v1586_v45, %v951_v39  ;;  %v958_v63 = vsub.f32 %v1610_v50, %v957_v40  ;;  %v965_v31 = vand.u32 4294901760, %v964_v29 }
  0xf6   :  { %802 = vmatpush.msrb.mxu2 %v1597_v5  ;;  %834 = vmatpush.msrb.mxu3 %v1581_v37  ;;  %v969_v13 = vand.u32 4294901760, %v1643_v6  ;;  %v767_v7 = vand.u32 4294901760, %v766_v41  ;;  %v778_v8 = vsub.f32 %v776_v27, %v777_v51  ;;  %v773_v34 = vand.u32 4294901760, %v772_v4 }
  0xf7   :  { %638 = vmatpush.msra.mxu1 %v1389_v46  ;;  %728 = vmatpush.msrb.mxu0 %v1600_v32  ;;  %v1656_v46 = vsub.f32 %v282_v49, %v1636_v23  ;;  %v959_v58 = vand.u32 4294901760, %v958_v63 }
  0xf8   :  { %805 = vmatpush.msrb.mxu2 %v764_v15  ;;  %836 = vmatpush.msrb.mxu3 %v1600_v32  ;;  %v970_v2 = vsub.f32 %v1643_v6, %v969_v13  ;;  %v779_v25 = vand.u32 4294901760, %v778_v8 }
  0xf9   :  { %640 = vmatpush.msra.mxu1 %v1372_v3  ;;  %680 = vmatmul.f32.vlgmr.msra.gmra.mxu2 %v1411_v61  ;;  %v953_v3 = vand.u32 4294901760, %v952_v42  ;;  %v975_v30 = vand.u32 4294901760, %v1656_v46 }
  0xfa   :  { %730 = vmatpush.msrb.mxu0 %v1607_v48  ;;  %808 = vmatpush.msrb.mxu2 %v770_v18  ;;  %v971_v56 = vand.u32 4294901760, %v970_v2 }
  0xfb   :  { %756 = vmatpush.msrb.mxu1 %v755_v11  ;;  %838 = vmatpush.msrb.mxu3 %v1607_v48  ;;  %v976_v38 = vsub.f32 %v1656_v46, %v975_v30 }
  0xfc   :  { %616 = vmatmul.f32.vlgmr.msra.gmra.mxu0 %v1449_v22  ;;  %706 = vmatmul.f32.vlgmr.msra.gmra.mxu3 %v1411_v61 }
  0xfd   :  { %860 = vmatpush.msra.mxu0 %v753_v52  ;;  %954 = vmatpush.msra.mxu3 %v953_v3  ;;  %v977_v62 = vand.u32 4294901760, %v976_v38 }
  0xfe   :  { %762 = vmatpush.msrb.mxu1 %v761_v20  ;;  %811 = vmatpush.msrb.mxu2 %v776_v27 }
  0xff   :  { %644 = vmatmul.f32.vlgmr.msra.gmra.mxu1 %v1480_v36  ;;  %864 = vmatpush.msra.mxu0 %v759_v16 }
 0x100   :  { %920 = vmatpush.msra.mxu2 %v1550_v17  ;;  %960 = vmatpush.msra.mxu3 %v959_v58 }
 0x101   :  { %768 = vmatpush.msrb.mxu1 %v767_v7  ;;  %868 = vmatpush.msra.mxu0 %v765_v12 }
 0x102   :  { %922 = vmatpush.msra.mxu2 %v1573_v26  ;;  %966 = vmatpush.msra.mxu3 %v965_v31 }
 0x103   :  { %774 = vmatpush.msrb.mxu1 %v773_v34  ;;  %814 = vmatmul.f32.vlgmr.msrb.gmra.mxu2 %v1449_v22 }
 0x104   :  { %872 = vmatpush.msra.mxu0 %v771_v57  ;;  %924 = vmatpush.msra.mxu2 %v1578_v47 }
 0x105   :  { %972 = vmatpush.msra.mxu3 %v971_v56  ;;  %780 = vmatpush.msrb.mxu1 %v779_v25 }
 0x106   :  { %736 = vmatmul.f32.vlgmr.msrb.gmra.mxu0 %v1508_v53  ;;  %842 = vmatmul.f32.vlgmr.msrb.gmra.mxu3 %v1480_v36 }
 0x107   :  { %876 = vmatpush.msra.mxu0 %v777_v51  ;;  %894 = vmatpush.msra.mxu1 %v1534_v33 }
 0x108   :  { %926 = vmatpush.msra.mxu2 %v1619_v14  ;;  %782 = vmatmul.f32.vlgmr.msrb.gmra.mxu1 %v1411_v61 }
 0x109   :  { %997 = vmatpush.msrb.mxu0 %v1586_v45  ;;  %978 = vmatpush.msra.mxu3 %v977_v62 }
 0x10a   :  { %896 = vmatpush.msra.mxu1 %v1558_v21  ;;  %928 = vmatpush.msra.mxu2 %v1636_v23 }
 0x10b   :  { %1000 = vmatpush.msrb.mxu0 %v1610_v50  ;;  %1092 = vmatpush.msrb.mxu3 %v1550_v17 }
 0x10c   :  { %1058 = vmatpush.msrb.mxu2 %v951_v39  ;;  %898 = vmatpush.msra.mxu1 %v1581_v37 }
 0x10d   :  { %1003 = vmatpush.msrb.mxu0 %v1613_v60  ;;  %934 = vmatmul.f32.vlgmr.msra.gmra.mxu2 %v1508_v53 }
 0x10e   :  { %1062 = vmatpush.msrb.mxu2 %v957_v40  ;;  %900 = vmatpush.msra.mxu1 %v1600_v32 }
 0x10f   :  { %1006 = vmatpush.msrb.mxu0 %v1643_v6  ;;  %1094 = vmatpush.msrb.mxu3 %v1573_v26 }
 0x110   :  { %1066 = vmatpush.msrb.mxu2 %v963_v24  ;;  %878 = vmatmul.f32.vlgmr.msra.gmra.mxu0 %v1411_v61 }
 0x111   :  { %902 = vmatpush.msra.mxu1 %v1607_v48  ;;  %980 = vmatmul.f32.vlgmr.msra.gmra.mxu3 %v1411_v61 }
 0x112   :  { %1009 = vmatpush.msrb.mxu0 %v1656_v46  ;;  %1070 = vmatpush.msrb.mxu2 %v969_v13 }
 0x113   :  { %1028 = vmatpush.msrb.mxu1 %v1550_v17  ;;  %1096 = vmatpush.msrb.mxu3 %v1578_v47 }
 0x114   :  { %904 = vmatmul.f32.vlgmr.msra.gmra.mxu1 %v1411_v61  ;;  %1074 = vmatpush.msrb.mxu2 %v975_v30 }
 0x115   :  { %1030 = vmatpush.msrb.mxu1 %v1573_v26  ;;  %1098 = vmatpush.msrb.mxu3 %v1619_v14 }
 0x116   :  { %1076 = vmatmul.f32.vlgmr.msrb.gmra.mxu2 %v1411_v61 }
 0x117   :  { %1032 = vmatpush.msrb.mxu1 %v1578_v47  ;;  %1100 = vmatpush.msrb.mxu3 %v1636_v23 }
 0x118   :  { %1012 = vmatmul.f32.vlgmr.msrb.gmra.mxu0 %v1449_v22 }
 0x119   :  { %1034 = vmatpush.msrb.mxu1 %v1619_v14  ;;  %1102 = vmatmul.f32.vlgmr.msrb.gmra.mxu3 %v1411_v61 }
 0x11b   :  { %1036 = vmatpush.msrb.mxu1 %v1636_v23 }
 0x11c   :  { %1040 = vmatmul.f32.vlgmr.msrb.gmra.mxu1 %v1480_v36 }
 0x160   :  { %v341_v35 = vpop.f32.mrf.mxu0 }
 0x166   :  { %v300_v53 = vpop.permute.xlu1 %299  ;;  %v387_v33 = vpop.f32.mrf.mxu1 }
 0x167   :  { %v342_v17 = vadd.f32 %v341_v35, %v300_v53  ;;  %v419_v21 = vpop.f32.mrf.mxu2  ;;  %v447_v0 = vpop.f32.mrf.mxu3 }
 0x169   :  { %v388_v43 = vadd.f32 %v387_v33, %v342_v17 }
 0x16b   :  { %v420_v10 = vadd.f32 %v419_v21, %v388_v43 }
 0x16c   :  { %v483_v26 = vpop.f32.mrf.mxu0 }
 0x16d   :  { %v448_v47 = vadd.f32 %v447_v0, %v420_v10 }
 0x16f   :  { %v484_v37 = vadd.f32 %v483_v26, %v448_v47 }
 0x170   :  { %v539_v22 = vpop.f32.mrf.mxu2  ;;  %v509_v44 = vpop.f32.mrf.mxu1 }
 0x171   :  { %v510_v45 = vadd.f32 %v509_v44, %v484_v37  ;;  %v540_v59 = vadd.f32 %v539_v22, %v300_v53 }
 0x173   :  { %v585_v61 = vpop.f32.mrf.mxu3  ;;  %v1106_v52 = vmax.f32 %v510_v45, 0.0 }
 0x174   :  { %v586_v9 = vadd.f32 %v585_v61, %v540_v59 }
 0x175   :  { %1110 = vst [vmem:[#allocation5] sm:$0xff] %v1106_v52 }
 0x179   :  { %v617_v36 = vpop.f32.mrf.mxu0 }
 0x17a   :  { %v618_v5 = vadd.f32 %v617_v36, %v586_v9 }
 0x17c   :  { %v645_v32 = vpop.f32.mrf.mxu1  ;;  %v681_v19 = vpop.f32.mrf.mxu2 }
 0x17d   :  { %v646_v48 = vadd.f32 %v645_v32, %v618_v5 }
 0x17f   :  { %v682_v50 = vadd.f32 %v681_v19, %v646_v48  ;;  %v707_v60 = vpop.f32.mrf.mxu3 }
 0x181   :  { %v708_v1 = vadd.f32 %v707_v60, %v682_v50 }
 0x183   :  { %v1107_v39 = vmax.f32 %v708_v1, 0.0  ;;  %v737_v14 = vpop.f32.mrf.mxu0 }
 0x184   :  { %v738_v15 = vadd.f32 %v737_v14, %v300_v53 }
 0x185   :  { %1111 = vst [vmem:[#allocation5 + $0x8] sm:$0xff] %v1107_v39  ;;  %v783_v55 = vpop.f32.mrf.mxu1 }
 0x186   :  { %v815_v54 = vpop.f32.mrf.mxu2  ;;  %v784_v49 = vadd.f32 %v783_v55, %v738_v15 }
 0x188   :  { %v816_v16 = vadd.f32 %v815_v54, %v784_v49 }
 0x189   :  { %v843_v18 = vpop.f32.mrf.mxu3 }
 0x18a   :  { %v844_v23 = vadd.f32 %v843_v18, %v816_v16 }
 0x18d   :  { %v879_v40 = vpop.f32.mrf.mxu0 }
 0x18e   :  { %v880_v24 = vadd.f32 %v879_v40, %v844_v23 }
 0x190   :  { %v935_v42 = vpop.f32.mrf.mxu2 }
 0x191   :  { %v905_v6 = vpop.f32.mrf.mxu1  ;;  %v936_v12 = vadd.f32 %v935_v42, %v300_v53 }
 0x192   :  { %v906_v27 = vadd.f32 %v905_v6, %v880_v24 }
 0x194   :  { %v1108_v11 = vmax.f32 %v906_v27, 0.0  ;;  %v981_v28 = vpop.f32.mrf.mxu3 }
 0x195   :  { %v982_v46 = vadd.f32 %v981_v28, %v936_v12  ;;  %v1013_v57 = vpop.f32.mrf.mxu0 }
 0x196   :  { %1112 = vst [vmem:[#allocation5 + $0x10] sm:$0xff] %v1108_v11 }
 0x197   :  { %v1014_v63 = vadd.f32 %v1013_v57, %v982_v46 }
 0x199   :  { %v1041_v29 = vpop.f32.mrf.mxu1  ;;  %v1077_v3 = vpop.f32.mrf.mxu2 }
 0x19a   :  { %v1042_v41 = vadd.f32 %v1041_v29, %v1014_v63 }
 0x19c   :  { %v1078_v13 = vadd.f32 %v1077_v3, %v1042_v41  ;;  %v1103_v51 = vpop.f32.mrf.mxu3 }
 0x19e   :  { %v1104_v20 = vadd.f32 %v1103_v51, %v1078_v13 }
 0x1a0   :  { %v1109_v4 = vmax.f32 %v1104_v20, 0.0 }
 0x1a2   :  { %1113 = vst [vmem:[#allocation5 + $0x18] sm:$0xff] %v1109_v4 }
 0x1a3   :  { %1124 = dma.vmem_to_hbm [thread:$0]  %s1120_s27, 512, %s1122_s30, [#allocation4]  }
 0x1a4   :  { %1194 = dma.done.wait [#allocation4], 512  }
 0x1a5   :  { %1195 = vsyncadd [#allocation4], 4294966784 }
 0x1a6   :  { %1129 = vsyncpa [#allocation3], 1 }
 0x1a7   :  { %1130 = vsyncpa [#allocation4], 1 }

</bundles_post_ra>
